<compile_context>
chip_gen: v5e
topology: v5e:2x2
jax: 0.10.0
libtpu: 0.0.40
codegen_flags: <defaults>
</compile_context>

<pallas_src>
import functools

import jax
import jax.numpy as jnp
from jax import lax
from jax.experimental import pallas as pl
from jax.experimental.pallas import tpu as pltpu


# ---------------------------------------------------------------------------
# Helpers
# ---------------------------------------------------------------------------
def _round_up(v, m):
    return ((v + m - 1) // m) * m


def _tpu_vmem_bytes():
    """Physical VMEM per TensorCore; conservative fallback when not queryable."""
    try:
        return int(pltpu.get_tpu_info().vmem_capacity_bytes)
    except Exception:
        return 64 << 20  # v7x per-TC size: the smallest of the supported generations


def _vmem_limit(cap):
    return int(min(cap, 128 << 20) * 0.9)


def _stack_params(params, c, c_pad, wkeys, bkeys):
    """Stack 1x1-conv weights/biases, padding each block to c_pad sublane rows."""
    def pad_rows(a):
        if c_pad == c:
            return a
        return jnp.pad(a, ((0, c_pad - c), (0, 0)))
    w = jnp.concatenate([pad_rows(params[k]) for k in wkeys], axis=0)
    b = jnp.concatenate([pad_rows(params[k]) for k in bkeys], axis=0)
    return w, b


# ---------------------------------------------------------------------------
# Single-pass kernel: whole (C, N) for one batch resident in VMEM
# ---------------------------------------------------------------------------
def _fused_kernel(x_ref, w_ref, b_ref, o_ref, *, c, c_pad, n_true, masked):
    x = x_ref[0]                                                    # (C, Npad)

    # One stacked (3*Cpad, C) @ (C, Npad) projection for g / theta / phi.
    proj = jnp.dot(w_ref[...], x, preferred_element_type=jnp.float32) + b_ref[...]
    g = proj[0:c]                                                   # (C, Npad)
    theta = proj[c_pad:c_pad + c]                                   # (C, Npad)
    phi = proj[2 * c_pad:2 * c_pad + c]                             # (C, Npad)

    # softmax over N for theta (exact; padded lanes masked out of the sums).
    p = jnp.exp(theta - jnp.max(theta, axis=-1, keepdims=True))     # (C, Npad)
    if masked:
        col = lax.broadcasted_iota(jnp.int32, p.shape, 1)
        p = jnp.where(col < n_true, p, 0.0)
    l = jnp.sum(p, axis=-1, keepdims=True)                          # (C, 1)

    # sim[c_phi, c_theta] = (phi @ exp(theta)^T) / l[c_theta]
    # Contract over the lane (N) axis of BOTH operands -> no (N, C) transpose.
    sim = lax.dot_general(phi, p, (((1,), (1,)), ((), ())),
                          preferred_element_type=jnp.float32) / l.T  # (C, C)

    # softmax over C for g (exact).
    g = jnp.exp(g - jnp.max(g, axis=0, keepdims=True))
    g = g / jnp.sum(g, axis=0, keepdims=True)                        # (C, Npad)

    y = x + jnp.dot(sim, g, preferred_element_type=jnp.float32)
    o_ref[0] = jnp.where(y >= 0.0, y, 0.1 * y).astype(o_ref.dtype)   # LeakyReLU(0.1)


# ---------------------------------------------------------------------------
# Two-pass fallback (large activations): pass 1 accumulates sim over N tiles
# ---------------------------------------------------------------------------
def _sim_kernel(x_ref, w_ref, b_ref, sim_ref, m_sc, l_sc, s_sc,
                *, c, c_pad, n_true, tn, masked):
    t = pl.program_id(1)

    @pl.when(t == 0)
    def _init():
        m_sc[...] = jnp.full(m_sc.shape, -jnp.inf, m_sc.dtype)
        l_sc[...] = jnp.zeros_like(l_sc)
        s_sc[...] = jnp.zeros_like(s_sc)

    x = x_ref[0]                                                    # (C, TN)
    # Fused theta/phi projection: one (2*Cpad, C) @ (C, TN) matmul + stacked bias.
    proj = jnp.dot(w_ref[...], x, preferred_element_type=jnp.float32) + b_ref[...]
    theta = proj[:c]                                                # (C, TN)
    phi = proj[c_pad:c_pad + c]                                     # (C, TN)

    # Online softmax over the (tiled) N axis.
    m_new = jnp.maximum(m_sc[...], jnp.max(theta, axis=-1, keepdims=True))  # (C, 1)
    a = jnp.exp(m_sc[...] - m_new)
    p = jnp.exp(theta - m_new)                                      # (C, TN)
    if masked:
        col = t * tn + lax.broadcasted_iota(jnp.int32, p.shape, 1)
        p = jnp.where(col < n_true, p, 0.0)
    l_sc[...] = a * l_sc[...] + jnp.sum(p, axis=-1, keepdims=True)
    s_sc[...] = s_sc[...] * a.T + lax.dot_general(
        phi, p, (((1,), (1,)), ((), ())), preferred_element_type=jnp.float32)
    m_sc[...] = m_new

    @pl.when(t == pl.num_programs(1) - 1)
    def _finalize():
        sim_ref[0] = (s_sc[...] / l_sc[...].T).astype(sim_ref.dtype)


def _apply_kernel(x_ref, wg_ref, bg_ref, sim_ref, o_ref):
    x = x_ref[0]                                                    # (C, TN)
    g = jnp.dot(wg_ref[...], x, preferred_element_type=jnp.float32) + bg_ref[...]
    g = jnp.exp(g - jnp.max(g, axis=0, keepdims=True))
    g = g / jnp.sum(g, axis=0, keepdims=True)                       # softmax over C
    att = jnp.dot(sim_ref[0], g, preferred_element_type=jnp.float32)
    y = x + att
    o_ref[0] = jnp.where(y >= 0.0, y, 0.1 * y).astype(o_ref.dtype)  # LeakyReLU(0.1)


# ---------------------------------------------------------------------------
# Wrappers
# ---------------------------------------------------------------------------
def _forward_single_pass(x, params, *, c_pad, n_lane, vmem_cap):
    b, c, h, w = x.shape
    n = h * w
    x_flat = x.reshape(b, c, n)
    if n_lane != n:
        x_flat = jnp.pad(x_flat, ((0, 0), (0, 0), (0, n_lane - n)))

    w_all, b_all = _stack_params(params, c, c_pad, ("wg", "wt", "wp"),
                                 ("bg", "bt", "bp"))                 # (3Cp,C), (3Cp,1)

    kernel = functools.partial(_fused_kernel, c=c, c_pad=c_pad,
                               n_true=n, masked=(n_lane != n))

    ce = pl.CostEstimate(
        flops=b * (2 * (3 * c) * c * n + 4 * c * c * n),
        transcendentals=2 * b * c * n,
        bytes_accessed=2 * b * c * n * 4 + 3 * c_pad * c * 4)

    out = pl.pallas_call(
        kernel,
        out_shape=jax.ShapeDtypeStruct((b, c, n_lane), x.dtype),
        grid=(b,),
        in_specs=[
            pl.BlockSpec((1, c, n_lane), lambda bi: (bi, 0, 0)),
            pl.BlockSpec((3 * c_pad, c), lambda bi: (0, 0)),
            pl.BlockSpec((3 * c_pad, 1), lambda bi: (0, 0)),
        ],
        out_specs=pl.BlockSpec((1, c, n_lane), lambda bi: (bi, 0, 0)),
        compiler_params=pltpu.CompilerParams(
            dimension_semantics=("parallel",),
            vmem_limit_bytes=_vmem_limit(vmem_cap)),
        cost_estimate=ce,
    )(x_flat, w_all, b_all)

    return out[:, :, :n].reshape(b, c, h, w)


def _forward_two_pass(x, params, *, c_pad, vmem_cap, budget):
    b, c, h, w = x.shape
    n = h * w

    # Size the N tile from the VMEM byte budget:
    # 2x double-buffered x tiles + stacked proj temp + exp temp (per lane, f32).
    per_lane_bytes = (2 * c + 2 * c_pad + 2 * c) * 4
    tn = max(512, (budget // per_lane_bytes) // 128 * 128)
    tn = min(tn, _round_up(n, 128))
    n_pad = _round_up(n, tn)
    nt = n_pad // tn
    masked = (n_pad != n)

    x_flat = x.reshape(b, c, n)
    if masked:
        x_flat = jnp.pad(x_flat, ((0, 0), (0, 0), (0, n_pad - n)))

    w_tp, b_tp = _stack_params(params, c, c_pad, ("wt", "wp"), ("bt", "bp"))
    wg, bg = params["wg"], params["bg"]
    vmem_limit = _vmem_limit(vmem_cap)

    sim_kernel = functools.partial(_sim_kernel, c=c, c_pad=c_pad,
                                   n_true=n, tn=tn, masked=masked)
    sim = pl.pallas_call(
        sim_kernel,
        out_shape=jax.ShapeDtypeStruct((b, c, c), jnp.float32),
        grid=(b, nt),
        in_specs=[
            pl.BlockSpec((1, c, tn), lambda bi, ti: (bi, 0, ti)),
            pl.BlockSpec((2 * c_pad, c), lambda bi, ti: (0, 0)),
            pl.BlockSpec((2 * c_pad, 1), lambda bi, ti: (0, 0)),
        ],
        out_specs=pl.BlockSpec((1, c, c), lambda bi, ti: (bi, 0, 0)),
        scratch_shapes=[
            pltpu.VMEM((c, 1), jnp.float32),   # running max m
            pltpu.VMEM((c, 1), jnp.float32),   # running sum l
            pltpu.VMEM((c, c), jnp.float32),   # running phi @ exp(theta)^T
        ],
        compiler_params=pltpu.CompilerParams(
            dimension_semantics=("parallel", "arbitrary"),
            vmem_limit_bytes=vmem_limit),
        cost_estimate=pl.CostEstimate(
            flops=b * (2 * (2 * c) * c * n + 2 * c * c * n),
            transcendentals=b * c * n,
            bytes_accessed=b * c * n * 4 + b * c * c * 4),
    )(x_flat, w_tp, b_tp)

    out = pl.pallas_call(
        _apply_kernel,
        out_shape=jax.ShapeDtypeStruct((b, c, n_pad), x.dtype),
        grid=(b, nt),
        in_specs=[
            pl.BlockSpec((1, c, tn), lambda bi, ti: (bi, 0, ti)),
            pl.BlockSpec((c, c), lambda bi, ti: (0, 0)),
            pl.BlockSpec((c, 1), lambda bi, ti: (0, 0)),
            pl.BlockSpec((1, c, c), lambda bi, ti: (bi, 0, 0)),
        ],
        out_specs=pl.BlockSpec((1, c, tn), lambda bi, ti: (bi, 0, ti)),
        compiler_params=pltpu.CompilerParams(
            dimension_semantics=("parallel", "parallel"),
            vmem_limit_bytes=vmem_limit),
        cost_estimate=pl.CostEstimate(
            flops=b * (2 * c * c * n + 2 * c * c * n),
            transcendentals=b * c * n,
            bytes_accessed=2 * b * c * n * 4),
    )(x_flat, wg, bg, sim)

    return out[:, :, :n].reshape(b, c, h, w)


def selfattention_forward(x, params):
    """x: (b, c, h, w) float32 NCHW. params: (C,C) 1x1-conv weights and (C,1) biases."""
    b, c, h, w = x.shape
    n = h * w
    c_pad = _round_up(c, 8)

    vmem_cap = _tpu_vmem_bytes()
    budget = int(vmem_cap * 0.4)        # headroom for double buffering / compiler temps

    # Single-pass resident path: x read once, written once; all projections fused.
    n_lane = _round_up(n, 128)
    resident_bytes = (4 * c + 3 * c_pad + 3 * c) * n_lane * 4
    if resident_bytes <= budget:
        return _forward_single_pass(x, params, c_pad=c_pad, n_lane=n_lane,
                                    vmem_cap=vmem_cap)
    return _forward_two_pass(x, params, c_pad=c_pad, vmem_cap=vmem_cap, budget=budget)


# ---------------------------------------------------------------------------
# Plain-JAX reference mirroring the PyTorch module exactly
# ---------------------------------------------------------------------------
def _reference_forward(x, params):
    b, c, h, w = x.shape
    n = h * w
    xf = x.reshape(b, c, n)

    def conv1x1(w_, b_):
        return jnp.einsum("oc,bcn->bon", w_, xf) + b_.reshape(1, c, 1)

    g_y = conv1x1(params["wg"], params["bg"])
    theta = jax.nn.softmax(conv1x1(params["wt"], params["bt"]), axis=-1)
    phi = conv1x1(params["wp"], params["bp"])
    sim = jnp.einsum("bcn,bnk->bck", phi, jnp.transpose(theta, (0, 2, 1)))
    g_sm = jax.nn.softmax(g_y, axis=1)
    att = jnp.einsum("bck,bkn->bcn", sim, g_sm).reshape(b, c, h, w)
    y = x + att
    return jnp.where(y >= 0, y, 0.1 * y)


def init_params(key, c):
    """1x1 conv weights as (C,C), biases as (C,1); PyTorch Conv2d default uniform bound."""
    ks = jax.random.split(key, 6)
    bound = 1.0 / jnp.sqrt(c)
    u = lambda k, shape: jax.random.uniform(k, shape, jnp.float32, -bound, bound)
    return {
        "wg": u(ks[0], (c, c)), "bg": u(ks[1], (c, 1)),
        "wt": u(ks[2], (c, c)), "bt": u(ks[3], (c, 1)),
        "wp": u(ks[4], (c, c)), "bp": u(ks[5], (c, 1)),
    }


if __name__ == "__main__":
    key = jax.random.PRNGKey(0)
    kx, kp = jax.random.split(key)

    b, c, h, w = 2, 4, 16, 16          # inplanes = 4
    x = jax.random.normal(kx, (b, c, h, w), jnp.float32)
    params = init_params(kp, c)

    y = selfattention_forward(x, params)
    y = jax.block_until_ready(y)

    y_ref = _reference_forward(x, params)
    assert y.shape == (b, c, h, w)
    assert jnp.allclose(y, y_ref, atol=1e-4, rtol=1e-4), "mismatch vs reference"

    print("KERNEL_OK")
</pallas_src>

<mosaic_0001>
module attributes {stable_mosaic.version = 11 : i64} {
  func.func @_fused_kernel(%arg0: i32, %arg1: memref<1x4x256xf32, #tpu.memory_space<vmem>>, %arg2: memref<24x4xf32, #tpu.memory_space<vmem>>, %arg3: memref<24x1xf32, #tpu.memory_space<vmem>>, %arg4: memref<1x4x256xf32, #tpu.memory_space<vmem>>) attributes {dimension_semantics = [#tpu.dimension_semantics<parallel>], iteration_bounds = array<i64: 2>, scalar_prefetch = 0 : i64, scratch_operands = 0 : i64, tpu.core_type = #tpu.core_type<tc>, window_params = [{transform_indices = @transform_0, window_bounds = array<i64: 1, 4, 256>}, {pipeline_mode = #tpu.pipeline_mode<synchronous>, transform_indices = @transform_1, window_bounds = array<i64: 24, 4>}, {pipeline_mode = #tpu.pipeline_mode<synchronous>, transform_indices = @transform_2, window_bounds = array<i64: 24, 1>}, {transform_indices = @transform_3, window_bounds = array<i64: 1, 4, 256>}]} {
    %c0 = arith.constant 0 : index
    %c0_0 = arith.constant 0 : index
    %c0_1 = arith.constant 0 : index
    %0 = vector.load %arg1[%c0, %c0_0, %c0_1] : memref<1x4x256xf32, #tpu.memory_space<vmem>>, vector<1x4x256xf32>
    %1 = vector.shape_cast %0 : vector<1x4x256xf32> to vector<4x256xf32>
    %c0_2 = arith.constant 0 : index
    %c0_3 = arith.constant 0 : index
    %2 = vector.load %arg2[%c0_2, %c0_3] : memref<24x4xf32, #tpu.memory_space<vmem>>, vector<24x4xf32>
    %cst = arith.constant dense<0.000000e+00> : vector<24x256xf32>
    %3 = tpu.matmul %2, %1, %cst {dimension_numbers = #tpu.dot_dimension_numbers<[1], [0], [0], [1], [0, 0, 1, 1], [], []>} : vector<24x4xf32>, vector<4x256xf32>, vector<24x256xf32> -> vector<24x256xf32>
    %c0_4 = arith.constant 0 : index
    %c0_5 = arith.constant 0 : index
    %4 = vector.load %arg3[%c0_4, %c0_5] : memref<24x1xf32, #tpu.memory_space<vmem>>, vector<24x1xf32>
    %5 = vector.broadcast %4 : vector<24x1xf32> to vector<24x256xf32>
    %6 = arith.addf %3, %5 : vector<24x256xf32>
    %7 = vector.extract_strided_slice %6 {offsets = [0, 0], sizes = [4, 256], strides = [1, 1]} : vector<24x256xf32> to vector<4x256xf32>
    %8 = vector.extract_strided_slice %6 {offsets = [8, 0], sizes = [4, 256], strides = [1, 1]} : vector<24x256xf32> to vector<4x256xf32>
    %9 = vector.extract_strided_slice %6 {offsets = [16, 0], sizes = [4, 256], strides = [1, 1]} : vector<24x256xf32> to vector<4x256xf32>
    %cst_6 = arith.constant dense<0xFF800000> : vector<4xf32>
    %10 = vector.multi_reduction <maximumf>, %8, %cst_6 [1] : vector<4x256xf32> to vector<4xf32>
    %11 = vector.shape_cast %10 : vector<4xf32> to vector<4x1xf32>
    %12 = vector.broadcast %11 : vector<4x1xf32> to vector<4x256xf32>
    %13 = arith.subf %8, %12 : vector<4x256xf32>
    %14 = math.exp %13 : vector<4x256xf32>
    %cst_7 = arith.constant dense<0.000000e+00> : vector<4xf32>
    %15 = vector.multi_reduction <add>, %14, %cst_7 [1] : vector<4x256xf32> to vector<4xf32>
    %16 = vector.shape_cast %15 : vector<4xf32> to vector<4x1xf32>
    %cst_8 = arith.constant dense<0.000000e+00> : vector<4x4xf32>
    %17 = tpu.matmul %9, %14, %cst_8 {dimension_numbers = #tpu.dot_dimension_numbers<[1], [1], [0], [0], [0, 0, 1, 0], [], []>} : vector<4x256xf32>, vector<4x256xf32>, vector<4x4xf32> -> vector<4x4xf32>
    %18 = tpu.transpose %16, [1, 0] : vector<4x1xf32> -> vector<1x4xf32>
    %19 = vector.broadcast %18 : vector<1x4xf32> to vector<4x4xf32>
    %20 = arith.divf %17, %19 : vector<4x4xf32>
    %cst_9 = arith.constant dense<0xFF800000> : vector<256xf32>
    %21 = vector.multi_reduction <maximumf>, %7, %cst_9 [0] : vector<4x256xf32> to vector<256xf32>
    %22 = vector.shape_cast %21 : vector<256xf32> to vector<1x256xf32>
    %23 = vector.broadcast %22 : vector<1x256xf32> to vector<4x256xf32>
    %24 = arith.subf %7, %23 : vector<4x256xf32>
    %25 = math.exp %24 : vector<4x256xf32>
    %cst_10 = arith.constant dense<0.000000e+00> : vector<256xf32>
    %26 = vector.multi_reduction <add>, %25, %cst_10 [0] : vector<4x256xf32> to vector<256xf32>
    %27 = vector.shape_cast %26 : vector<256xf32> to vector<1x256xf32>
    %28 = vector.broadcast %27 : vector<1x256xf32> to vector<4x256xf32>
    %29 = arith.divf %25, %28 : vector<4x256xf32>
    %cst_11 = arith.constant dense<0.000000e+00> : vector<4x256xf32>
    %30 = tpu.matmul %20, %29, %cst_11 {dimension_numbers = #tpu.dot_dimension_numbers<[1], [0], [0], [1], [0, 0, 1, 1], [], []>} : vector<4x4xf32>, vector<4x256xf32>, vector<4x256xf32> -> vector<4x256xf32>
    %31 = arith.addf %1, %30 : vector<4x256xf32>
    %cst_12 = arith.constant 0.000000e+00 : f32
    %32 = vector.broadcast %cst_12 : f32 to vector<4x256xf32>
    %33 = arith.cmpf oge, %31, %32 : vector<4x256xf32>
    %cst_13 = arith.constant 1.000000e-01 : f32
    %34 = vector.broadcast %cst_13 : f32 to vector<4x256xf32>
    %35 = arith.mulf %34, %31 : vector<4x256xf32>
    %36 = arith.select %33, %31, %35 : vector<4x256xi1>, vector<4x256xf32>
    %c0_14 = arith.constant 0 : index
    %c0_15 = arith.constant 0 : index
    %c0_16 = arith.constant 0 : index
    %37 = vector.load %arg4[%c0_14, %c0_15, %c0_16] : memref<1x4x256xf32, #tpu.memory_space<vmem>>, vector<1x4x256xf32>
    %38 = vector.shape_cast %37 : vector<1x4x256xf32> to vector<4x256xf32>
    %39 = vector.shape_cast %36 : vector<4x256xf32> to vector<1x4x256xf32>
    tpu.vector_store %arg4[%c0_14, %c0_15, %c0_16], %39 {strides = array<i32>} : memref<1x4x256xf32, #tpu.memory_space<vmem>>, vector<1x4x256xf32>,
    return
  }
  func.func @transform_0(%arg0: i32) -> (i32, i32, i32) {
    %c0_i32 = arith.constant 0 : i32
    %c0_i32_0 = arith.constant 0 : i32
    %c0_i32_1 = arith.constant 0 : i32
    return %arg0, %c0_i32, %c0_i32_0 : i32, i32, i32
  }
  func.func @transform_1(%arg0: i32) -> (i32, i32) {
    %c0_i32 = arith.constant 0 : i32
    %c0_i32_0 = arith.constant 0 : i32
    %c0_i32_1 = arith.constant 0 : i32
    return %c0_i32, %c0_i32_0 : i32, i32
  }
  func.func @transform_2(%arg0: i32) -> (i32, i32) {
    %c0_i32 = arith.constant 0 : i32
    %c0_i32_0 = arith.constant 0 : i32
    %c0_i32_1 = arith.constant 0 : i32
    return %c0_i32, %c0_i32_0 : i32, i32
  }
  func.func @transform_3(%arg0: i32) -> (i32, i32, i32) {
    %c0_i32 = arith.constant 0 : i32
    %c0_i32_0 = arith.constant 0 : i32
    %c0_i32_1 = arith.constant 0 : i32
    return %arg0, %c0_i32, %c0_i32_0 : i32, i32, i32
  }
}

</mosaic_0001>

<bundles_post_ra>
// kernel: tpu_custom_call.1
= control target key start
LH: loop header
LB: loop body
LE: loop exit
PB: predicated region body
PF: predicated region fallthrough
CT: control target
= control target key end

     0   :  { %8 = vsyncpa [#allocation3], 0  ;;  %s873_s0 = inlined_call_operand.vmem [shape: f32[2,4,256], index: 0, kind: input, shape index: {}]   ;;  %s874_s1 = inlined_call_operand.vmem [shape: f32[24,4], index: 1, kind: input, shape index: {}]   ;;  %s875_s2 = inlined_call_operand.vmem [shape: f32[24,1], index: 2, kind: input, shape index: {}]   ;;  %s876_s3 = inlined_call_operand.hbm [shape: f32[2,4,256], index: 3, kind: output, shape index: {}]  }
   0x1   :  { %10 = vsyncpa [#allocation3 + $0x1], 0  ;;  %s733_s12 = smov 0   ;;  %s735_s13 = smov 0  }
   0x2   :  { %s737_s14 = smov 0   ;;  %s739_s15 = smov 0  }
   0x3 LB: > { %s754_s16 = sadd.s32 4294967295, %s710_s15   ;;  %s565_s17 = sadd.s32 4294967294, %s710_s15   ;;  %s710_s15 = sphi %s739_s15, %s882_s15   ;;  %s706_s14 = sphi %s737_s14, %s881_s14   ;;  %s702_s13 = sphi %s735_s13, %s880_s13   ;;  %s698_s12 = sphi %s733_s12, %s879_s12  }
   0x4   : > { %s758_s18 = sadd.s32 1, %s710_s15   ;;  %s91_s19 = sadd.s32 1, %s706_s14 }
   0x5   : > { %s88_s20 = ssub.s32 %s710_s15, %s758_s18  ;;  %p101_p0 = scmp.ne.s32.totalorder %s706_s14, %s702_s13 }
   0x6   : > { %p89_p1 = scmp.eq.s32.totalorder %s88_s20, 0  ;;  %p102_p2 = scmp.eq.s32.totalorder %s754_s16, 1 }
   0x7   : > { %p107_p3 = scmp.ne.s32.totalorder %s702_s13, %s698_s12  ;;  %p108_p4 = scmp.eq.s32.totalorder %s565_s17, 1 }
   0x8   : > { %s769_s21 = scalar_select %p89_p1, %s706_s14, %s91_s19  }
   0x9   : > { %p771_p5 = por %p102_p2, %p101_p0  ;;  %p775_p6 = por %p108_p4, %p107_p3 }
   0xa   : > { %p568_p7 = scmp.ge.s32.totalorder %s710_s15, 1  ;;  %p140_p8 = scmp.lt.s32.totalorder %s710_s15, 3 }
   0xc   : > { %p141_p9 = pnand %p568_p7, %p140_p8 }
   0xd   : > { %p164_p10 = scmp.lt.s32.totalorder (!%p141_p9), %s754_s16, 1  ;;  %s161_s20 = sand.u32 (!%p141_p9), 1, %s702_s13  }
   0xe   : > { %144 = sbr.rel (%p141_p9) target bundleno = 737 (0x2e1), region = 32  ;;  %s569_s24 = sshll.u32 (!%p141_p9), %s161_s20, 3 }
   0xf   : > { %s590_s25 = sshll.u32 (!%p141_p9), %s754_s16, 3  ;;  %s668_s9 = scalar_lea.hbm (!%p141_p9), %s876_s3, 16 }
  0x13   : > { %v175_v0 = vld [vmem:[%s875_s2 + $0x10] sm:$0xff]  ;;  %v712_v1 = vmov 0   ;;  %v174_v2 = vld [vmem:[%s875_s2 + $0x8] sm:$0xff]  ;;  %s165_s28 = scalar_select %p164_p10, %s754_s16, 1  ;;  %v173_v4 = vld [vmem:[%s875_s2] sm:$0xff]  ;;  %vm205_vm0 = vcmask 1043456  }
  0x14   : > { %633 = vset.pattern.permute.xlu1 %v712_v1  ;;  %632 = vset.pattern.permute.xlu0 %v712_v1  ;;  %v170_v5 = vld [vmem:[%s874_s1] sm:$0xff]  ;;  %vm195_vm1 = vcmask 31744   ;;  %v171_v8 = vld [vmem:[%s874_s1 + $0x8] sm:$0xff]  ;;  %v172_v57 = vld [vmem:[%s874_s1 + $0x10] sm:$0xff]  ;;  %s490_s16 = scalar_lea.sflag [#allocation3], %s161_s20 }
  0x15   : > { %188 = vperm.xlu1 %633, %v175_v0   ;;  %183 = vperm.xlu0 %632, %v174_v2   ;;  %s589_s29 = sshll.u32 %s165_s28, 3  ;;  %s501_s28 = scalar_lea.hbm %s876_s3, %s590_s25 }
  0x16   : > { %s168_s5 = scalar_lea.vmem %s873_s0, %s589_s29  ;;  %s163_s29 = scalar_lea.vmem [#allocation2], %s569_s24 }
  0x17   : > { %v792_v3 = vld [vmem:[%s168_s5] sm:$0xff]  ;;  %s503_s30 = sshll.u32 %s163_s29, 4  ;;  %s505_s4 = sshll.u32 %s501_s28, 4  ;;  %s504_s30 = int_to_ptr.vmem [resolvable:$true] %s503_s30  ;;  %s506_s4 = int_to_ptr.hbm [resolvable:$true] %s505_s4 }
  0x18   : > { %192 = vst [vmem:[#allocation1] ss:$2 sm:$0xff] %v792_v3  ;;  %s662_s5 = sshra.s32 %s506_s4, 4  ;;  %s663_s5 = int_to_ptr.hbm [resolvable:$true] %s662_s5 }
  0x19   : > { %s664_s6 = scalar_lea.hbm %s663_s5, 8  ;;  %p669_p0 = scmp.lt.s32.totalorder %s663_s5, %s876_s3 }
  0x1a   : > { %p665_p11 = scmp.ne.s32.totalorder %s663_s5, %s664_s6  ;;  %p670_p1 = scmp.lt.s32.totalorder %s668_s9, %s664_s6 }
  0x1c   : > { %p666_p12 = pnand %p665_p11, %p771_p5  ;;  %p671_p2 = por %p670_p1, %p669_p0 }
  0x1d   : > { %178 = vperm.xlu1 %633, %v173_v4  }
  0x1e   : > { %p667_p13 = pneg %p666_p12 }
  0x1f   : > { %v193_v6 = vld.sshfl [vmem:[#allocation1] sm:$0xff pattern:$0x75316420]  ;;  %v194_v7 = vld.sshfl [vmem:[#allocation1 + $0x8] sm:$0xff pattern:$0x75316420] }
  0x20   : > { %572 = vmatpush.msk.msra.mxu0 %vm205_vm0, %v193_v6  ;;  %576 = vmatpush.msk.msra.mxu1 %vm205_vm0, %v194_v7  ;;  %p672_p3 = pnand %p671_p2, %p667_p13 }
  0x21   : > { %573 = vmatmul.msk.f32.vlgmr.msra.gmra.mxu0 %vm195_vm1, %v170_v5  ;;  %577 = vmatmul.msk.f32.vlgmr.msra.gmra.mxu1 %vm195_vm1, %v170_v5 }
  0x29   : > { %574 = vmatmul.msk.f32.gmra.mxu0 %vm195_vm1, %v171_v8  ;;  %578 = vmatmul.msk.f32.gmra.mxu1 %vm195_vm1, %v171_v8 }
  0x31   : > { %575 = vmatmul.msk.f32.gmra.mxu0 %vm195_vm1, %v172_v57  ;;  %579 = vmatmul.msk.f32.gmra.mxu1 %vm195_vm1, %v172_v57 }
  0x87   : > { %v184_v11 = vpop.permute.xlu0 %183  ;;  %v818_v19 = vpop.permute.xlu1 %188 }
  0x8f   : > { %v179_v20 = vpop.permute.xlu1 %178 }
  0x9e   : > { %v227_v9 = vpop.f32.mrf.mxu0  ;;  %v253_v10 = vpop.f32.mrf.mxu1 }
  0x9f   : > { %v228_v21 = vadd.f32 %v227_v9, %v179_v20  ;;  %v254_v22 = vadd.f32 %v253_v10, %v179_v20 }
  0xa1   : > { %v366_v23 = vsel %vm205_vm0, %v228_v21, -inf  ;;  %v373_v24 = vsel %vm205_vm0, %v254_v22, -inf }
  0xa2   : > { %v367_v25 = vrot.slane %v366_v23, 4  ;;  %v374_v26 = vrot.slane %v373_v24, 4 }
  0xa4   : > { %v368_v27 = vmax.f32 %v366_v23, %v367_v25  ;;  %v375_v28 = vmax.f32 %v373_v24, %v374_v26 }
  0xa6   : > { %v230_v12 = vpop.f32.mrf.mxu0  ;;  %v256_v13 = vpop.f32.mrf.mxu1  ;;  %v369_v29 = vrot.slane %v368_v27, 2  ;;  %v376_v30 = vrot.slane %v375_v28, 2 }
  0xa7   : > { %v810_v14 = vadd.f32 %v230_v12, %v184_v11  ;;  %v812_v15 = vadd.f32 %v256_v13, %v184_v11 }
  0xa8   : > { %v370_v31 = vmax.f32 %v368_v27, %v369_v29  ;;  %v377_v32 = vmax.f32 %v375_v28, %v376_v30 }
  0xa9   : > { %v262_v16 = vsel %vm205_vm0, %v810_v14, -inf  ;;  %v263_v17 = vsel %vm205_vm0, %v812_v15, -inf }
  0xaa   : > { %v264_v18 = vmax.f32 %v262_v16, %v263_v17  ;;  %v371_v33 = vrot.slane %v370_v31, 1  ;;  %v378_v34 = vrot.slane %v377_v32, 1 }
  0xac   : > { %265 = vmax.xlane.f32.xlu0 %v264_v18  ;;  %v372_v35 = vmax.f32 %v370_v31, %v371_v33  ;;  %v379_v36 = vmax.f32 %v377_v32, %v378_v34 }
  0xae   : > { %v380_v37 = vsub.f32 %v228_v21, %v372_v35  ;;  %v381_v38 = vsub.f32 %v254_v22, %v379_v36  ;;  %v233_v28 = vpop.f32.mrf.mxu0  ;;  %v259_v29 = vpop.f32.mrf.mxu1 }
  0xaf   : > { %v234_v30 = vadd.f32 %v233_v28, %v818_v19  ;;  %v260_v31 = vadd.f32 %v259_v29, %v818_v19 }
  0xb0   : > { %v382_v39 = vmul.f32 1.442695, %v380_v37  ;;  %v384_v40 = vmul.f32 1.442695, %v381_v38 }
  0xb2   : > { %634 = vpow2.f32 %v382_v39 }
  0xb3   : > { %636 = vpow2.f32 %v384_v40 }
  0xb8   : > { %v635_v41 = vpop.eup %634 }
  0xb9   : > { %v637_v42 = vpop.eup %636  ;;  %v386_v43 = vsel %vm205_vm0, %v635_v41, 0.0 }
  0xba   : > { %v393_v44 = vsel %vm205_vm0, %v637_v42, 0.0  ;;  %v387_v45 = vrot.slane %v386_v43, 4 }
  0xbb   : > { %v394_v46 = vrot.slane %v393_v44, 4 }
  0xbc   : > { %v388_v47 = vadd.f32 %v387_v45, %v386_v43 }
  0xbd   : > { %v395_v48 = vadd.f32 %v394_v46, %v393_v44 }
  0xbe   : > { %v389_v49 = vrot.slane %v388_v47, 2 }
  0xbf   : > { %v396_v50 = vrot.slane %v395_v48, 2 }
  0xc0   : > { %v390_v51 = vadd.f32 %v389_v49, %v388_v47 }
  0xc1   : > { %v397_v52 = vadd.f32 %v396_v50, %v395_v48 }
  0xc2   : > { %v391_v53 = vrot.slane %v390_v51, 1 }
  0xc3   : > { %v398_v54 = vrot.slane %v397_v52, 1 }
  0xc4   : > { %v392_v55 = vadd.f32 %v391_v53, %v390_v51 }
  0xc5   : > { %v399_v56 = vadd.f32 %v398_v54, %v397_v52 }
  0xc6   : > { %638 = vrcp.f32 %v392_v55  ;;  %v409_v7 = vand.u32 2147483647, %v392_v55  ;;  %v411_v8 = vand.u32 2147483648, %v392_v55  ;;  %vm405_vm4 = vweird.f32 %v392_v55 }
  0xc7   : > { %640 = vrcp.f32 %v399_v56  ;;  %v426_v12 = vand.u32 2147483648, %v399_v56  ;;  %vm420_vm6 = vweird.f32 %v399_v56  ;;  %v424_v13 = vand.u32 2147483647, %v399_v56 }
  0xc8   : > { %vm410_vm8 = vcmp.eq.f32.partialorder %v409_v7, 8.507059e+37 }
  0xc9   : > { %vm425_vm9 = vcmp.eq.f32.partialorder %v424_v13, 8.507059e+37 }
  0xcc   : > { %v639_v58 = vpop.eup %638 }
  0xcd   : > { %v641_v59 = vpop.eup %640  ;;  %v401_v60 = vmul.f32 %v639_v58, %v392_v55  ;;  %vm406_vm2 = vweird.f32 %v639_v58 }
  0xce   : > { %v416_v61 = vmul.f32 %v641_v59, %v399_v56  ;;  %vm421_vm3 = vweird.f32 %v641_v59  ;;  %vm407_vm5 = vmor %vm405_vm4, %vm406_vm2 }
  0xcf   : > { %v402_v62 = vsub.f32 1.0, %v401_v60  ;;  %vm422_vm7 = vmor %vm420_vm6, %vm421_vm3 }
  0xd0   : > { %v417_v63 = vsub.f32 1.0, %v416_v61 }
  0xd1   : > { %v403_v0 = vmul.f32 %v639_v58, %v402_v62 }
  0xd2   : > { %v418_v1 = vmul.f32 %v641_v59, %v417_v63 }
  0xd3   : > { %v404_v6 = vadd.f32 %v639_v58, %v403_v0 }
  0xd4   : > { %v419_v9 = vadd.f32 %v641_v59, %v418_v1 }
  0xd5   : > { %v408_v16 = vsel %vm407_vm5, %v639_v58, %v404_v6 }
  0xd6   : > { %v423_v17 = vsel %vm422_vm7, %v641_v59, %v419_v9 }
 0x11f   : > { %v266_v2 = vpop.xlane.xlu0 %265 }
 0x120   : > { %v267_v4 = vsub.f32 %v810_v14, %v266_v2  ;;  %v268_v5 = vsub.f32 %v812_v15, %v266_v2  ;;  %v412_v14 = vor.u32 1.1754944e-38, %v411_v8  ;;  %v427_v15 = vor.u32 1.1754944e-38, %v426_v12 }
 0x122   : > { %v269_v10 = vmul.f32 1.442695, %v267_v4  ;;  %v271_v11 = vmul.f32 1.442695, %v268_v5  ;;  %v413_v18 = vsel %vm410_vm8, %v412_v14, %v408_v16  ;;  %v428_v20 = vsel %vm425_vm9, %v427_v15, %v423_v17 }
 0x123   : > { %v414_v22 = vmul.f32 %v635_v41, %v413_v18  ;;  %v429_v24 = vmul.f32 %v637_v42, %v428_v20 }
 0x124   : > { %642 = vpow2.f32 %v269_v10 }
 0x125   : > { %644 = vpow2.f32 %v271_v11 }
 0x12a   : > { %v643_v21 = vpop.eup %642 }
 0x12b   : > { %v645_v23 = vpop.eup %644  ;;  %293 = vmatpush.xpose.msra.mxu2 %v643_v21  ;;  %v273_v25 = vsel %vm205_vm0, %v643_v21, 0.0 }
 0x12c   : > { %313 = vmatpush.xpose.msra.mxu3 %v645_v23  ;;  %v274_v26 = vsel %vm205_vm0, %v645_v23, 0.0 }
 0x12d   : > { %v275_v27 = vadd.f32 %v274_v26, %v273_v25 }
 0x12e   : > { %294 = vmatmul.f32.vlgmr.msra.gmra.mxu2 %v234_v30 }
 0x12f   : > { %580 = vmatpush.msk.msrb.mxu2 %vm205_vm0, %v414_v22  ;;  %276 = vadd.xlane.f32.xlu2 %v275_v27 }
 0x130   : > { %582 = vmatpush.msk.msrb.mxu3 %vm205_vm0, %v429_v24 }
 0x131   : > { %314 = vmatmul.f32.vlgmr.msra.gmra.mxu3 %v260_v31 }
 0x1a2   : > { %v277_v32 = vpop.xlane.xlu2 %276 }
 0x1a3   : > { %318 = vxpose.xlu2.b32.start.end [1/1] (short) (narrow) %v277_v32, 8 }
 0x1b1   : > { %v295_v38 = vpop.f32.mrf.mxu2 }
 0x1b4   : > { %v315_v39 = vpop.f32.mrf.mxu3 }
 0x1b5   : > { %v316_v43 = vadd.f32 %v315_v39, %v295_v38 }
 0x23c   : > { %v334_v33 = vpop.trf.xlu2 }
 0x23d   : > { %v350_v34 = vperm.slane %v334_v33, 0 }
 0x23f   : > { %646 = vrcp.f32 %v350_v34  ;;  %v362_v40 = vand.u32 2147483648, %v350_v34  ;;  %v360_v42 = vand.u32 2147483647, %v350_v34  ;;  %vm356_vm11 = vweird.f32 %v350_v34 }
 0x241   : > { %v363_v44 = vor.u32 1.1754944e-38, %v362_v40  ;;  %vm361_vm13 = vcmp.eq.f32.partialorder %v360_v42, 8.507059e+37 }
 0x245   : > { %v647_v35 = vpop.eup %646 }
 0x246   : > { %v352_v36 = vmul.f32 %v647_v35, %v350_v34  ;;  %vm357_vm10 = vweird.f32 %v647_v35 }
 0x247   : > { %vm358_vm12 = vmor %vm356_vm11, %vm357_vm10 }
 0x248   : > { %v353_v37 = vsub.f32 1.0, %v352_v36 }
 0x24a   : > { %v354_v41 = vmul.f32 %v647_v35, %v353_v37 }
 0x24c   : > { %v355_v19 = vadd.f32 %v647_v35, %v354_v41 }
 0x24e   : > { %v359_v45 = vsel %vm358_vm12, %v647_v35, %v355_v19 }
 0x24f   : > { %v364_v46 = vsel %vm361_vm13, %v363_v44, %v359_v45 }
 0x250   : > { %v365_v47 = vmul.f32 %v364_v46, %v316_v43 }
 0x252   : > { %581 = vmatmul.msk.f32.vlgmr.msrb.gmra.mxu2 %vm195_vm1, %v365_v47  ;;  %583 = vmatmul.msk.f32.vlgmr.msrb.gmra.mxu3 %vm195_vm1, %v365_v47 }
 0x2d5   : > { %v476_v48 = vpop.f32.mrf.mxu3  ;;  %v456_v50 = vpop.f32.mrf.mxu2 }
 0x2d6   : > { %v481_v49 = vrot.slane %v476_v48, 4 }
 0x2d8   : > { %v482_v51 = vsel %vm205_vm0, %v456_v50, %v481_v49 }
 0x2d9   : > { %v484_v52 = vadd.f32 %v482_v51, %v792_v3 }
 0x2db   : > { %vm485_vm14 = vcmp.ge.f32.partialorder %v484_v52, 0.0  ;;  %v486_v53 = vmul.f32 0.1, %v484_v52 }
 0x2dd   : > { %v487_v54 = vsel %vm485_vm14, %v484_v52, %v486_v53 }
 0x2de   : > { %488 = vst [vmem:[%s163_s29] sm:$0xff] %v487_v54 }
 0x2df   : > { %675 = shalt.err (!%p672_p3)
}
 0x2e0   : > { %591 = dma.vmem_to_hbm [thread:$0]  (%p771_p5), %s504_s30, 128, %s506_s4, %s490_s16  }
 0x2e1 PF: > { %p597_p4 = scmp.ge.s32.totalorder %s710_s15, 2  ;;  %s517_s17 = sand.u32 1, %s698_s12  }
 0x2e2   : > { %s518_s19 = scalar_lea.sflag [#allocation3], %s517_s17 }
 0x2e3   : > { %p594_p7 = pnand %p597_p4, %p775_p6 }
 0x2e5   : > { %p595_p8 = pneg %p594_p7 }
 0x2e7   : > { %693 = dma.done.wait (%p595_p8), %s518_s19, 128  }
 0x2e8   : > { %695 = vsyncadd (%p595_p8), %s518_s19, 4294967168  ;;  %p13_p9 = scmp.ge.s32.totalorder %s758_s18, 4   ;;  %s879_s12 = smov %s702_s13 }
 0x2e9   : > { %s880_s13 = smov %s706_s14  ;;  %s881_s14 = smov %s769_s21 }
 0x2ea   : > { %s882_s15 = smov %s758_s18  ;;  %15 = sbr.rel (!%p13_p9) target bundleno = 3 (0x3), region = 67 }
 0x2ef   :  { %524 = vsyncpa [#allocation3], 1 }
 0x2f0   :  { %526 = vsyncpa [#allocation3 + $0x1], 1 }

</bundles_post_ra>
